<compile_context>
chip_gen: v7x
topology: tpu7x:2x2x1
jax: 0.10.0
libtpu: 0.0.40
codegen_flags: <defaults>
</compile_context>

<pallas_src>
import jax
import jax.numpy as jnp
from jax.experimental import pallas as pl
from jax.experimental.pallas import tpu as pltpu


def _pick_tile(n, max_tile, align):
    """Largest tile <= max_tile that is a multiple of `align` and divides n.

    Falls back to the full dimension (always a legal block shape) when no
    aligned divisor exists or when n itself is small."""
    if n <= max_tile:
        return n
    t = (max_tile // align) * align
    while t >= align:
        if n % t == 0:
            return t
        t -= align
    return n


def _scale3d_kernel(x_ref, g_ref, b_ref, o_ref):
    # x_ref: (tm, tn) activation tile, g_ref/b_ref: (tm, 1) per-row scale/shift.
    x = x_ref[...].astype(jnp.float32)
    o_ref[...] = (x * g_ref[...] + b_ref[...]).astype(o_ref.dtype)


def scale3d(x, gamma, beta):
    """Pallas implementation of Scale3d.forward for x of shape (B, C, D, H, W)."""
    B, C, D, H, W = x.shape
    S = D * H * W
    M = B * C

    # Flatten to rows = (batch, channel), lanes = spatial. Row r has channel
    # r % C, so tiling gamma/beta over the batch gives the per-row affine.
    x2 = x.reshape(M, S)
    g_rows = jnp.tile(gamma.astype(jnp.float32), B).reshape(M, 1)
    b_rows = jnp.tile(beta.astype(jnp.float32), B).reshape(M, 1)

    tm = _pick_tile(M, 512, 8)      # sublane tile (rows)
    tn = _pick_tile(S, 2048, 128)   # lane tile (spatial), 128-aligned when possible
    grid = (M // tm, S // tn)

    out = pl.pallas_call(
        _scale3d_kernel,
        out_shape=jax.ShapeDtypeStruct((M, S), x.dtype),
        grid=grid,
        in_specs=[
            pl.BlockSpec((tm, tn), lambda i, j: (i, j)),
            pl.BlockSpec((tm, 1), lambda i, j: (i, 0)),
            pl.BlockSpec((tm, 1), lambda i, j: (i, 0)),
        ],
        out_specs=pl.BlockSpec((tm, tn), lambda i, j: (i, j)),
        compiler_params=pltpu.CompilerParams(
            dimension_semantics=("parallel", "parallel")),
    )(x2, g_rows, b_rows)
    return out.reshape(B, C, D, H, W)


if __name__ == "__main__":
    key = jax.random.PRNGKey(0)
    kx, kg, kb = jax.random.split(key, 3)

    # Small shapes consistent with the module: batch=2, channels=4, spatial=16.
    B, C, D, H, W = 2, 4, 16, 16, 16
    x = jax.random.normal(kx, (B, C, D, H, W), jnp.float32)
    gamma = jax.random.normal(kg, (C,), jnp.float32)
    beta = jax.random.normal(kb, (C,), jnp.float32)

    y = scale3d(x, gamma, beta)
    jax.block_until_ready(y)

    # Reference (same math as the PyTorch per-channel loop).
    ref = x * gamma.reshape(1, C, 1, 1, 1) + beta.reshape(1, C, 1, 1, 1)
    assert y.shape == x.shape and y.dtype == x.dtype
    assert jnp.allclose(y, ref, atol=1e-5, rtol=1e-5)
    print("KERNEL_OK")
</pallas_src>

<mosaic_0001>
module attributes {stable_mosaic.version = 11 : i64} {
  func.func @_scale3d_kernel(%arg0: i32, %arg1: i32, %arg2: memref<8x2048xf32, #tpu.memory_space<vmem>>, %arg3: memref<8x1xf32, #tpu.memory_space<vmem>>, %arg4: memref<8x1xf32, #tpu.memory_space<vmem>>, %arg5: memref<8x2048xf32, #tpu.memory_space<vmem>>) attributes {dimension_semantics = [#tpu.dimension_semantics<parallel>, #tpu.dimension_semantics<parallel>], iteration_bounds = array<i64: 1, 2>, scalar_prefetch = 0 : i64, scratch_operands = 0 : i64, tpu.core_type = #tpu.core_type<tc>, window_params = [{transform_indices = @transform_0, window_bounds = array<i64: 8, 2048>}, {transform_indices = @transform_1, window_bounds = array<i64: 8, 1>}, {transform_indices = @transform_2, window_bounds = array<i64: 8, 1>}, {transform_indices = @transform_3, window_bounds = array<i64: 8, 2048>}]} {
    %c0 = arith.constant 0 : index
    %c0_0 = arith.constant 0 : index
    %0 = vector.load %arg2[%c0, %c0_0] : memref<8x2048xf32, #tpu.memory_space<vmem>>, vector<8x2048xf32>
    %c0_1 = arith.constant 0 : index
    %c0_2 = arith.constant 0 : index
    %1 = vector.load %arg3[%c0_1, %c0_2] : memref<8x1xf32, #tpu.memory_space<vmem>>, vector<8x1xf32>
    %2 = vector.broadcast %1 : vector<8x1xf32> to vector<8x2048xf32>
    %3 = arith.mulf %0, %2 : vector<8x2048xf32>
    %c0_3 = arith.constant 0 : index
    %c0_4 = arith.constant 0 : index
    %4 = vector.load %arg4[%c0_3, %c0_4] : memref<8x1xf32, #tpu.memory_space<vmem>>, vector<8x1xf32>
    %5 = vector.broadcast %4 : vector<8x1xf32> to vector<8x2048xf32>
    %6 = arith.addf %3, %5 : vector<8x2048xf32>
    %c0_5 = arith.constant 0 : index
    %c0_6 = arith.constant 0 : index
    %7 = vector.load %arg5[%c0_5, %c0_6] : memref<8x2048xf32, #tpu.memory_space<vmem>>, vector<8x2048xf32>
    tpu.vector_store %arg5[%c0_5, %c0_6], %6 {strides = array<i32>} : memref<8x2048xf32, #tpu.memory_space<vmem>>, vector<8x2048xf32>,
    return
  }
  func.func @transform_0(%arg0: i32, %arg1: i32) -> (i32, i32) {
    %c0_i32 = arith.constant 0 : i32
    return %arg0, %arg1 : i32, i32
  }
  func.func @transform_1(%arg0: i32, %arg1: i32) -> (i32, i32) {
    %c0_i32 = arith.constant 0 : i32
    %c0_i32_0 = arith.constant 0 : i32
    return %arg0, %c0_i32 : i32, i32
  }
  func.func @transform_2(%arg0: i32, %arg1: i32) -> (i32, i32) {
    %c0_i32 = arith.constant 0 : i32
    %c0_i32_0 = arith.constant 0 : i32
    return %arg0, %c0_i32 : i32, i32
  }
  func.func @transform_3(%arg0: i32, %arg1: i32) -> (i32, i32) {
    %c0_i32 = arith.constant 0 : i32
    return %arg0, %arg1 : i32, i32
  }
}

</mosaic_0001>

<bundles_post_ra>
// kernel: tpu_custom_call.1
= control target key start
LH: loop header
LB: loop body
LE: loop exit
PB: predicated region body
PF: predicated region fallthrough
CT: control target
= control target key end

     0   :  { %8 = vsyncpa [#allocation3], 0  ;;  %s869_s0 = inlined_call_operand.hbm [shape: f32[8,4096], index: 0, kind: input, shape index: {}]   ;;  %s870_s1 = inlined_call_operand.vmem [shape: f32[8,1], index: 1, kind: input, shape index: {}]   ;;  %s871_s2 = inlined_call_operand.vmem [shape: f32[8,1], index: 2, kind: input, shape index: {}]   ;;  %s872_s3 = inlined_call_operand.hbm [shape: f32[8,4096], index: 3, kind: output, shape index: {}]  }
   0x1   :  { %10 = vsyncpa [#allocation3 + $0x1], 0 }
   0x2   :  { %11 = vsyncpa [#allocation4], 0 }
   0x3   :  { %13 = vsyncpa [#allocation4 + $0x1], 0  ;;  %s668_s12 = smov 0   ;;  %s670_s13 = smov 0  }
   0x4   :  { %s672_s14 = smov 0   ;;  %s674_s15 = smov 0  }
   0x5   :  { %s676_s16 = smov 0   ;;  %s678_s17 = smov 0  }
   0x6 LB: > { %s448_s18 = sadd.s32 4294967295, %s643_s17   ;;  %s449_s19 = sadd.s32 4294967294, %s643_s17   ;;  %s643_s17 = sphi %s678_s17, %s19_s17   ;;  %s639_s16 = sphi %s676_s16, %s888_s16   ;;  %s635_s15 = sphi %s674_s15, %s887_s15   ;;  %s631_s14 = sphi %s672_s14, %s886_s14   ;;  %s627_s13 = sphi %s670_s13, %s885_s13   ;;  %s623_s12 = sphi %s668_s12, %s884_s12  }
   0x7   : > { %s28_s20 = sadd.s32 1, %s639_s16  ;;  %s40_s21 = sadd.s32 1, %s631_s14 }
   0x8   : > { %p29_p0 = scmp.ge.s32.totalorder %s28_s20, 2  ;;  %p47_p1 = scmp.ne.s32.totalorder %s631_s14, %s627_s13 }
   0x9   : > { %p48_p2 = scmp.eq.s32.totalorder %s643_s17, 0  ;;  %p53_p3 = scmp.ne.s32.totalorder %s627_s13, %s623_s12 }
   0xa   : > { %s890_s20 = smov (%p29_p0, %s28_s20), 0  ;;  %p54_p5 = scmp.eq.s32.totalorder %s448_s18, 0 }
   0xb   : > { %p709_p4 = por %p48_p2, %p47_p1  ;;  %s36_s23 = ssub.s32 %s639_s16, %s890_s20 }
   0xc   : > { %p131_p6 = scmp.eq.s32.totalorder %s448_s18, 1  ;;  %p38_p7 = scmp.eq.s32.totalorder %s36_s23, 0 }
   0xd   : > { %p715_p8 = por %p54_p5, %p53_p3  ;;  %p137_p10 = scmp.eq.s32.totalorder %s449_s19, 1 }
   0xe   : > { %p719_p9 = por %p131_p6, %p47_p1  ;;  %p479_p13 = scmp.lt.s32.totalorder %s643_s17, 2 }
   0xf   : > { %s724_s26 = scalar_select %p38_p7, %s631_s14, %s40_s21  }
  0x10   : > { %s876_s25 = scalar_select %p719_p9, 1, 0 }
  0x11   : > { %p726_p11 = por %p137_p10, %p53_p3  ;;  %s171_s28 = sand.u32 1, %s631_s14  }
  0x12   : > { %s454_s29 = sshll.u32 %s171_s28, 7  ;;  %s465_s30 = sshll.u32 %s639_s16, 11 }
  0x13   : > { %s877_s27 = scalar_select %p726_p11, 1, 0 }
  0x14   : > { %s737_s6 = scalar_lea.hbm %s869_s0, %s465_s30  ;;  %s175_s7 = scalar_lea.vmem [#allocation2], %s454_s29 }
  0x15   : > { %s185_s8 = sshll.u32 %s175_s7, 4  ;;  %p743_p0 = pnand %p479_p13, %p709_p4  ;;  %s739_s8 = int_to_ptr.vmem [resolvable:$true] %s185_s8 }
  0x16   : > { %s172_s10 = scalar_lea.sflag [#allocation3], %s171_s28  ;;  %s531_s11 = scalar_lea.hbm %s737_s6, 2048 }
  0x17   : > { %p532_p3 = scmp.ne.s32.totalorder %s737_s6, %s531_s11  ;;  %p533_p5 = pneg %p743_p0 }
  0x18   : > { %s536_s21 = scalar_lea.hbm %s869_s0, 4096  ;;  %p537_p4 = scmp.lt.u32.totalorder %s737_s6, %s869_s0 }
  0x19   : > { %p534_p6 = pnand %p533_p5, %p532_p3  ;;  %p538_p10 = scmp.lt.u32.totalorder %s536_s21, %s531_s11 }
  0x1a   : > { %p540_p12 = scmp.lt.u32.totalorder %s531_s11, %s737_s6 }
  0x1b   : > { %p535_p7 = pneg %p534_p6  ;;  %p539_p13 = por %p538_p10, %p537_p4 }
  0x1d   : > { %p541_p1 = por %p540_p12, %p539_p13 }
  0x1f   : > { %p542_p2 = pnand %p541_p1, %p535_p7 }
  0x21   : > { %545 = shalt.err (!%p542_p2)
}
  0x22   : > { %s546_s28 = scalar_lea.vmem %s739_s8, 2048  ;;  %s645_s29 = smov [#allocation2]  }
  0x23   : > { %p547_p3 = scmp.ne.s32.totalorder %s739_s8, %s546_s28  ;;  %s551_s30 = sshll.u32 %s645_s29, 4  ;;  %s552_s30 = int_to_ptr.vmem [resolvable:$false] %s551_s30 }
  0x24   : > { %s553_s4 = scalar_lea.vmem %s552_s30, 4096  ;;  %p554_p9 = scmp.lt.s32.totalorder %s739_s8, %s552_s30 }
  0x25   : > { %p549_p6 = pnand %p547_p3, %p533_p5  ;;  %p555_p4 = scmp.lt.s32.totalorder %s553_s4, %s546_s28 }
  0x27   : > { %p550_p11 = pneg %p549_p6  ;;  %p556_p10 = por %p555_p4, %p554_p9 }
  0x29   : > { %p557_p12 = pnand %p556_p10, %p550_p11 }
  0x2b   : > { %560 = shalt.err (!%p557_p12)
}
  0x2c   : > { %474 = dma.hbm_to_vmem [thread:$0]  (!%p743_p0), %s737_s6, 2048, %s739_s8, %s172_s10  }
  0x2d   : > { %p879_p1 = scmp.lt.s32.totalorder %s643_s17, 3  ;;  %p880_p2 = scmp.ge.s32.totalorder %s643_s17, 1 }
  0x2f   : > { %p191_p5 = pnand %p880_p2, %p879_p1 }
  0x30   : > { %s779_s5 = sand.u32 (!%p191_p5), 1, %s627_s13  }
  0x31   : > { %194 = sbr.rel (%p191_p5) target bundleno = 215 (0xd7), region = 32  ;;  %s458_s7 = sshll.u32 (!%p191_p5), %s779_s5, 7 }
  0x32   : > { %s197_s11 = scalar_lea.sflag (!%p191_p5), [#allocation3], %s779_s5  ;;  %s200_s9 = scalar_lea.vmem (!%p191_p5), [#allocation2], %s458_s7 }
  0x38   : > { %614 = dma.done.wait (%p715_p8), %s197_s11, 2048  }
  0x39   : > { %616 = vsyncadd (%p715_p8), %s197_s11, 4294965248  ;;  %v646_v0 = vmov 0   ;;  %v257_v1 = vld [vmem:[%s870_s1] sm:$0xff]  ;;  %v242_v4 = vld [vmem:[%s200_s9 + $0x8] sm:$0xff]  ;;  %s466_s24 = sshll.u32 %s635_s15, 11  ;;  %s798_s19 = scalar_lea.vmem [#allocation5], %s458_s7 }
  0x3a   : > { %530 = vset.pattern.permute.xlu0 %v646_v0  ;;  %v279_v2 = vld [vmem:[%s871_s2] sm:$0xff]  ;;  %v243_v5 = vld [vmem:[%s200_s9 + $0x10] sm:$0xff]  ;;  %v244_v6 = vld [vmem:[%s200_s9 + $0x18] sm:$0xff]  ;;  %s334_s21 = sshll.u32 %s798_s19, 4  ;;  %s812_s23 = scalar_lea.hbm %s872_s3, %s466_s24  ;;  %s814_s21 = int_to_ptr.vmem [resolvable:$true] %s334_s21 }
  0x3b   : > { %260 = vperm.xlu0 %530, %v257_v1   ;;  %v241_v3 = vld [vmem:[%s200_s9] sm:$0xff]  ;;  %v246_v8 = vld [vmem:[%s200_s9 + $0x28] sm:$0xff]  ;;  %v247_v9 = vld [vmem:[%s200_s9 + $0x30] sm:$0xff]  ;;  %s318_s28 = scalar_lea.sflag [#allocation4], %s779_s5  ;;  %s561_s29 = scalar_lea.vmem %s814_s21, 2048 }
  0x3c   : > { %v245_v7 = vld [vmem:[%s200_s9 + $0x20] sm:$0xff]  ;;  %v248_v10 = vld [vmem:[%s200_s9 + $0x38] sm:$0xff]  ;;  %v250_v12 = vld [vmem:[%s200_s9 + $0x48] sm:$0xff]  ;;  %p562_p8 = scmp.ne.s32.totalorder %s814_s21, %s561_s29  ;;  %p881_p9 = scmp.ne.s32.totalorder %s876_s25, 0 }
  0x3d   : > { %v249_v11 = vld [vmem:[%s200_s9 + $0x40] sm:$0xff]  ;;  %v251_v14 = vld [vmem:[%s200_s9 + $0x50] sm:$0xff]  ;;  %v252_v15 = vld [vmem:[%s200_s9 + $0x58] sm:$0xff]  ;;  %s647_s30 = smov [#allocation5]  }
  0x3e   : > { %v253_v16 = vld [vmem:[%s200_s9 + $0x60] sm:$0xff]  ;;  %v254_v17 = vld [vmem:[%s200_s9 + $0x68] sm:$0xff]  ;;  %v255_v18 = vld [vmem:[%s200_s9 + $0x70] sm:$0xff]  ;;  %p563_p11 = pnand %p562_p8, %p881_p9  ;;  %s565_s4 = sshll.u32 %s647_s30, 4  ;;  %s566_s4 = int_to_ptr.vmem [resolvable:$false] %s565_s4 }
  0x3f   : > { %282 = vperm.xlu0 %530, %v279_v2   ;;  %v256_v19 = vld [vmem:[%s200_s9 + $0x78] sm:$0xff]  ;;  %s567_s7 = scalar_lea.vmem %s566_s4, 4096  ;;  %p568_p7 = scmp.lt.s32.totalorder %s814_s21, %s566_s4 }
  0x40   : > { %p564_p0 = pneg %p563_p11  ;;  %p569_p13 = scmp.lt.s32.totalorder %s567_s7, %s561_s29 }
  0x42   : > { %p570_p3 = por %p569_p13, %p568_p7 }
  0x44   : > { %p571_p6 = pnand %p570_p3, %p564_p0 }
  0xba   : > { %v261_v13 = vpop.permute.xlu0 %260 }
  0xbb   : > { %v263_v20 = vmul.f32 %v261_v13, %v241_v3  ;;  %v264_v21 = vmul.f32 %v261_v13, %v242_v4  ;;  %v265_v22 = vmul.f32 %v261_v13, %v243_v5  ;;  %v266_v23 = vmul.f32 %v261_v13, %v244_v6 }
  0xbc   : > { %v267_v24 = vmul.f32 %v261_v13, %v245_v7  ;;  %v268_v25 = vmul.f32 %v261_v13, %v246_v8  ;;  %v269_v26 = vmul.f32 %v261_v13, %v247_v9  ;;  %v270_v27 = vmul.f32 %v261_v13, %v248_v10 }
  0xbd   : > { %v271_v28 = vmul.f32 %v261_v13, %v249_v11  ;;  %v272_v29 = vmul.f32 %v261_v13, %v250_v12  ;;  %v273_v30 = vmul.f32 %v261_v13, %v251_v14  ;;  %v274_v31 = vmul.f32 %v261_v13, %v252_v15 }
  0xbe   : > { %v283_v32 = vpop.permute.xlu0 %282  ;;  %v275_v33 = vmul.f32 %v261_v13, %v253_v16  ;;  %v276_v34 = vmul.f32 %v261_v13, %v254_v17  ;;  %v277_v35 = vmul.f32 %v261_v13, %v255_v18  ;;  %v278_v36 = vmul.f32 %v261_v13, %v256_v19 }
  0xbf   : > { %v285_v37 = vadd.f32 %v283_v32, %v263_v20  ;;  %v286_v38 = vadd.f32 %v283_v32, %v264_v21  ;;  %v287_v39 = vadd.f32 %v283_v32, %v265_v22  ;;  %v288_v40 = vadd.f32 %v283_v32, %v266_v23 }
  0xc0   : > { %v289_v41 = vadd.f32 %v283_v32, %v267_v24  ;;  %v290_v42 = vadd.f32 %v283_v32, %v268_v25  ;;  %v291_v43 = vadd.f32 %v283_v32, %v269_v26  ;;  %v292_v44 = vadd.f32 %v283_v32, %v270_v27 }
  0xc1   : > { %v293_v45 = vadd.f32 %v283_v32, %v271_v28  ;;  %v294_v46 = vadd.f32 %v283_v32, %v272_v29  ;;  %v295_v47 = vadd.f32 %v283_v32, %v273_v30  ;;  %v296_v48 = vadd.f32 %v283_v32, %v274_v31  ;;  %301 = vst [vmem:[%s798_s19] sm:$0xff] %v285_v37 }
  0xc2   : > { %302 = vst [vmem:[%s798_s19 + $0x8] sm:$0xff] %v286_v38  ;;  %303 = vst [vmem:[%s798_s19 + $0x10] sm:$0xff] %v287_v39  ;;  %v297_v49 = vadd.f32 %v283_v32, %v275_v33  ;;  %v298_v50 = vadd.f32 %v283_v32, %v276_v34  ;;  %v299_v51 = vadd.f32 %v283_v32, %v277_v35 }
  0xc3   : > { %304 = vst [vmem:[%s798_s19 + $0x18] sm:$0xff] %v288_v40  ;;  %v300_v52 = vadd.f32 %v283_v32, %v278_v36  ;;  %305 = vst [vmem:[%s798_s19 + $0x20] sm:$0xff] %v289_v41 }
  0xc4   : > { %306 = vst [vmem:[%s798_s19 + $0x28] sm:$0xff] %v290_v42  ;;  %307 = vst [vmem:[%s798_s19 + $0x30] sm:$0xff] %v291_v43 }
  0xc5   : > { %308 = vst [vmem:[%s798_s19 + $0x38] sm:$0xff] %v292_v44  ;;  %309 = vst [vmem:[%s798_s19 + $0x40] sm:$0xff] %v293_v45 }
  0xc6   : > { %310 = vst [vmem:[%s798_s19 + $0x48] sm:$0xff] %v294_v46  ;;  %311 = vst [vmem:[%s798_s19 + $0x50] sm:$0xff] %v295_v47 }
  0xc7   : > { %312 = vst [vmem:[%s798_s19 + $0x58] sm:$0xff] %v296_v48  ;;  %313 = vst [vmem:[%s798_s19 + $0x60] sm:$0xff] %v297_v49 }
  0xc8   : > { %314 = vst [vmem:[%s798_s19 + $0x68] sm:$0xff] %v298_v50  ;;  %315 = vst [vmem:[%s798_s19 + $0x70] sm:$0xff] %v299_v51 }
  0xc9   : > { %316 = vst [vmem:[%s798_s19 + $0x78] sm:$0xff] %v300_v52 }
  0xca   : > { %574 = shalt.err (!%p571_p6)
}
  0xcb   : > { %s575_s5 = scalar_lea.hbm %s812_s23, 2048  ;;  %s579_s6 = scalar_lea.hbm %s872_s3, 4096 }
  0xcc   : > { %p576_p4 = scmp.ne.s32.totalorder %s812_s23, %s575_s5  ;;  %p580_p1 = scmp.lt.u32.totalorder %s812_s23, %s872_s3 }
  0xcd   : > { %p581_p2 = scmp.lt.u32.totalorder %s579_s6, %s575_s5  ;;  %p583_p8 = scmp.lt.u32.totalorder %s575_s5, %s812_s23 }
  0xce   : > { %p577_p10 = pnand %p576_p4, %p881_p9 }
  0xcf   : > { %p582_p5 = por %p581_p2, %p580_p1 }
  0xd0   : > { %p578_p12 = pneg %p577_p10 }
  0xd1   : > { %p584_p11 = por %p583_p8, %p582_p5 }
  0xd3   : > { %p585_p0 = pnand %p584_p11, %p578_p12 }
  0xd5   : > { %588 = shalt.err (!%p585_p0)
}
  0xd6   : > { %469 = dma.vmem_to_hbm [thread:$0]  (%p881_p9), %s814_s21, 2048, %s812_s23, %s318_s28  }
  0xd7 PF: > { %s346_s18 = sand.u32 1, %s623_s12   ;;  %p882_p7 = scmp.ne.s32.totalorder %s877_s27, 0 }
  0xd8   : > { %p883_p13 = scmp.ge.s32.totalorder %s643_s17, 2  ;;  %s347_s24 = scalar_lea.sflag [#allocation4], %s346_s18 }
  0xda   : > { %p476_p3 = pnand %p883_p13, %p882_p7 }
  0xdc   : > { %618 = dma.done.wait (!%p476_p3), %s347_s24, 2048  }
  0xdd   : > { %620 = vsyncadd (!%p476_p3), %s347_s24, 4294965248  ;;  %s19_s17 = sadd.s32 1, %s643_s17   ;;  %s884_s12 = smov %s627_s13 }
  0xde   : > { %p16_p6 = scmp.ge.s32.totalorder %s19_s17, 4   ;;  %s885_s13 = smov %s631_s14 }
  0xdf   : > { %s886_s14 = smov %s724_s26  ;;  %s887_s15 = smov %s639_s16 }
  0xe0   : > { %s888_s16 = smov %s890_s20  ;;  %18 = sbr.rel (!%p16_p6) target bundleno = 6 (0x6), region = 83 }
  0xe7   :  { %352 = vsyncpa [#allocation3], 1 }
  0xe8   :  { %354 = vsyncpa [#allocation3 + $0x1], 1 }
  0xe9   :  { %355 = vsyncpa [#allocation4], 1 }
  0xea   :  { %357 = vsyncpa [#allocation4 + $0x1], 1 }

</bundles_post_ra>
